<compile_context>
chip_gen: v5e
topology: v5e:2x2
jax: 0.10.0
libtpu: 0.0.40
codegen_flags: <defaults>
</compile_context>

<pallas_src>
import jax
import jax.numpy as jnp
from jax.experimental import pallas as pl
from jax.experimental.pallas import tpu as pltpu

# ---------------- problem sizes ----------------
B, C, H, W = 2, 4, 16, 16
HW = H * W
T = 100                       # diffusion steps
BETA = (1e-4, 0.02)
NUM_CLASSES = 10
D_CLS = 16                    # per-class embedding dim
TWO_D = 2 * D_CLS
CE = 32                       # encoder.class_emb_dim (class_encoder output)
E = 32                        # class_projection output (context dim)
TD = 32                       # time-embedding dim
HD = 32                       # model hidden channels
# TODO(synk): drop_prob (classifier-free context dropout) is unused in the
# reference forward() and is therefore not modeled here.

# All conditioning feature dims are 32, so every block-diagonal conditioning
# matrix is (F, F) with F = B * 32 = 64.
assert TWO_D == CE == E == TD == HD
F = B * HD            # 64
BC = B * C            # 8
WSQ_ROWS = 5 * F + BC  # 328 rows in the packed weight slab
N_VEC_COLS = 7        # embcat, temb, be, b1, b2, sr, nr


# ---------------- Pallas kernel (single invocation, no grid) ----------------
def trainer_kernel(xe_ref, vecs_ref, wsq_ref, loss_ref):
    # ---- unpack images / noise:  (2*BC, HW) = [x0 ; eps]
    x0 = xe_ref[0:BC, :]                    # (8, 256)
    eps = xe_ref[BC:2 * BC, :]              # (8, 256)

    # ---- unpack small per-call vectors (batch-packed columns)
    embcat = vecs_ref[:, 0:1]               # (F, 1)  concatenated class embeddings
    temb = vecs_ref[:, 1:2]                 # (F, 1)  time embeddings
    be = vecs_ref[:, 2:3]                   # (F, 1)  class-encoder bias (tiled over B)
    b1 = vecs_ref[:, 3:4]                   # (F, 1)  conditioning bias (tiled over B)
    b2 = vecs_ref[0:BC, 4:5]                # (BC, 1) output bias (tiled over B)
    sr = vecs_ref[0:BC, 5:6]                # (BC, 1) sqrt(alpha_bar_t) per row
    nr = vecs_ref[0:BC, 6:7]                # (BC, 1) sqrt(1-alpha_bar_t) per row

    # ---- unpack block-diagonal (batch-replicated) weights
    We_bd = wsq_ref[0 * F:1 * F, :]         # (F, F)   class_encoder
    Wp_bd = wsq_ref[1 * F:2 * F, :]         # (F, F)   class_projection
    Wt_bd = wsq_ref[2 * F:3 * F, :]         # (F, F)   time-emb projection
    Wc_bd = wsq_ref[3 * F:4 * F, :]         # (F, F)   context projection
    W1_bd = wsq_ref[4 * F:5 * F, 0:BC]      # (F, BC)  conv1 (1x1)
    W2_bd = wsq_ref[5 * F:5 * F + BC, :]    # (BC, F)  conv2 (1x1)

    # ---- diffusion forward process: x_t = sqrt(abar_t) x0 + sqrt(1-abar_t) eps
    x_t = sr * x0 + nr * eps                # (8, 256)

    # ---- encoder.class_encoder + encoder.class_projection (per batch via block-diag)
    cr = jnp.tanh(jnp.dot(We_bd, embcat, preferred_element_type=jnp.float32) + be)
    ctx = jnp.dot(Wp_bd, cr, preferred_element_type=jnp.float32)      # (F, 1)

    # ---- conditioning vector: time-emb proj + context proj + bias
    cond = (jnp.dot(Wt_bd, temb, preferred_element_type=jnp.float32)
            + jnp.dot(Wc_bd, ctx, preferred_element_type=jnp.float32)
            + b1)                                                      # (F, 1)

    # ---- model: conditional 1x1-conv MLP over the HW pixel (lane) axis
    h = jnp.maximum(
        jnp.dot(W1_bd, x_t, preferred_element_type=jnp.float32) + cond, 0.0)   # (F, 256)
    eps_theta = jnp.dot(W2_bd, h, preferred_element_type=jnp.float32) + b2      # (8, 256)

    # ---- F.mse_loss(eps_theta, eps, reduction='none')
    d = eps_theta - eps
    loss_ref[...] = d * d


def run_kernel(xe, vecs, wsq):
    flops = 2 * (4 * F * F              # conditioning chain matvecs
                 + F * BC * HW          # conv1
                 + BC * F * HW)         # conv2
    bytes_accessed = 4 * (2 * BC * HW + F * N_VEC_COLS + WSQ_ROWS * F + BC * HW)
    return pl.pallas_call(
        trainer_kernel,
        out_shape=jax.ShapeDtypeStruct((BC, HW), jnp.float32),
        cost_estimate=pl.CostEstimate(flops=flops,
                                      transcendentals=F,
                                      bytes_accessed=bytes_accessed),
    )(xe, vecs, wsq)


# ---------------- parameters / buffers ----------------
def init_params(key):
    ks = jax.random.split(key, 9)

    def init(k, shape, fan_in):
        return (jax.random.normal(k, shape, dtype=jnp.float32)
                / jnp.sqrt(jnp.float32(fan_in)))

    beta_t = jnp.linspace(BETA[0], BETA[1], T, dtype=jnp.float32)
    alpha_t = 1.0 - beta_t
    alpha_bar = jnp.cumprod(alpha_t, axis=0)
    return dict(
        beta_t=beta_t,
        signal_rate=jnp.sqrt(alpha_bar),
        noise_rate=jnp.sqrt(1.0 - alpha_bar),
        E1=init(ks[0], (NUM_CLASSES, D_CLS), 1.0),
        E2=init(ks[1], (NUM_CLASSES, D_CLS), 1.0),
        We=init(ks[2], (TWO_D, CE), TWO_D),
        be=jnp.zeros((CE,), jnp.float32),
        Wp=init(ks[3], (CE, E), CE),
        Temb=init(ks[4], (T, TD), 1.0),
        Wt=init(ks[5], (TD, HD), TD),
        Wc=init(ks[6], (E, HD), E),
        W1=init(ks[7], (C, HD), C),
        b1=jnp.zeros((HD,), jnp.float32),
        W2=init(ks[8], (HD, C), HD),
        b2=jnp.zeros((C,), jnp.float32),
    )


def pack_weights(params):
    """Stack batch-replicated block-diagonal weights into one (328, 64) slab."""
    bd = lambda w: jax.scipy.linalg.block_diag(*([w] * B)).astype(jnp.float32)
    We_bd = bd(params["We"].T)                         # (F, F)
    Wp_bd = bd(params["Wp"].T)                         # (F, F)
    Wt_bd = bd(params["Wt"].T)                         # (F, F)
    Wc_bd = bd(params["Wc"].T)                         # (F, F)
    W1_bd = bd(params["W1"].T)                         # (F, BC)
    W1_pad = jnp.zeros((F, F), jnp.float32).at[:, :BC].set(W1_bd)
    W2_bd = bd(params["W2"].T)                         # (BC, F)
    return jnp.concatenate([We_bd, Wp_bd, Wt_bd, Wc_bd, W1_pad, W2_bd], axis=0)


def pack_vecs(params, embcat, temb, sr_t, nr_t):
    """Pack all small per-call vectors / biases / scales into one (64, 7) array."""
    col = lambda v: v.reshape(-1, 1).astype(jnp.float32)

    def pad_col(v):
        out = jnp.zeros((F, 1), jnp.float32)
        return out.at[:v.shape[0], :].set(col(v))

    return jnp.concatenate([
        col(embcat.reshape(-1)),              # col 0: class embeddings (batch-packed)
        col(temb.reshape(-1)),                # col 1: time embeddings  (batch-packed)
        col(jnp.tile(params["be"], B)),       # col 2: be tiled over batch
        col(jnp.tile(params["b1"], B)),       # col 3: b1 tiled over batch
        pad_col(jnp.tile(params["b2"], B)),   # col 4: b2 tiled over batch (8 rows)
        pad_col(jnp.repeat(sr_t, C)),         # col 5: signal_rate[t] per image row
        pad_col(jnp.repeat(nr_t, C)),         # col 6: noise_rate[t]  per image row
    ], axis=1)


def _sample(params, x_0, c1, c2, key):
    """Glue: t ~ randint(T), epsilon ~ N(0,1), plus the table gathers."""
    k_t, k_eps = jax.random.split(key)
    t = jax.random.randint(k_t, (B,), 0, T)
    epsilon = jax.random.normal(k_eps, x_0.shape, dtype=jnp.float32)
    sr_t = params["signal_rate"][t]
    nr_t = params["noise_rate"][t]
    embcat = jnp.concatenate([params["E1"][c1], params["E2"][c2]], axis=-1)  # (B, 2D)
    temb = params["Temb"][t]                                                 # (B, TD)
    return t, epsilon, sr_t, nr_t, embcat, temb


def forward_pallas(params, wsq, x_0, c1, c2, key):
    _, epsilon, sr_t, nr_t, embcat, temb = _sample(params, x_0, c1, c2, key)
    xe = jnp.concatenate([x_0.reshape(BC, HW), epsilon.reshape(BC, HW)],
                         axis=0).astype(jnp.float32)                 # (16, 256)
    vecs = pack_vecs(params, embcat, temb, sr_t, nr_t)               # (64, 7)
    loss_flat = run_kernel(xe, vecs, wsq)                            # (8, 256)
    return loss_flat.reshape(B, C, H, W)


def forward_reference(params, x_0, c1, c2, key):
    """Pure-JAX reference with identical sampling, for correctness check."""
    _, epsilon, sr_t, nr_t, embcat, temb = _sample(params, x_0, c1, c2, key)
    cr = jnp.tanh(embcat @ params["We"] + params["be"])          # class_encoder
    ctx = cr @ params["Wp"]                                      # class_projection
    cond = temb @ params["Wt"] + ctx @ params["Wc"] + params["b1"]  # (B, HD)
    x_t = (sr_t[:, None, None, None] * x_0
           + nr_t[:, None, None, None] * epsilon)                # (B, C, H, W)
    x_t_flat = x_t.reshape(B, C, HW)
    h = jnp.maximum(jnp.einsum("bcx,ch->bhx", x_t_flat, params["W1"])
                    + cond[:, :, None], 0.0)
    eps_theta = (jnp.einsum("bhx,hc->bcx", h, params["W2"])
                 + params["b2"][None, :, None])
    loss = (eps_theta - epsilon.reshape(B, C, HW)) ** 2
    return loss.reshape(B, C, H, W)


if __name__ == "__main__":
    key = jax.random.PRNGKey(0)
    k_params, k_x, k_c1, k_c2, k_fwd = jax.random.split(key, 5)

    params = init_params(k_params)
    wsq = pack_weights(params)                                   # (328, 64)

    x_0 = jax.random.normal(k_x, (B, C, H, W), dtype=jnp.float32)
    c1 = jax.random.randint(k_c1, (B,), 0, NUM_CLASSES)
    c2 = jax.random.randint(k_c2, (B,), 0, NUM_CLASSES)

    loss = forward_pallas(params, wsq, x_0, c1, c2, k_fwd)
    loss = jax.block_until_ready(loss)

    loss_ref = forward_reference(params, x_0, c1, c2, k_fwd)
    assert loss.shape == (B, C, H, W)
    max_err = float(jnp.max(jnp.abs(loss - loss_ref)))
    if max_err > 1e-4:
        raise AssertionError(f"mismatch vs reference: max abs err = {max_err}")

    print("KERNEL_OK")
</pallas_src>

<mosaic_0001>
module attributes {stable_mosaic.version = 11 : i64} {
  func.func @trainer_kernel(%arg0: memref<16x256xf32, #tpu.memory_space<vmem>>, %arg1: memref<64x7xf32, #tpu.memory_space<vmem>>, %arg2: memref<328x64xf32, #tpu.memory_space<vmem>>, %arg3: memref<8x256xf32, #tpu.memory_space<vmem>>) attributes {dimension_semantics = [], scalar_prefetch = 0 : i64, scratch_operands = 0 : i64, tpu.core_type = #tpu.core_type<tc>} {
    %c0 = arith.constant 0 : index
    %c0_0 = arith.constant 0 : index
    %0 = vector.load %arg0[%c0, %c0_0] : memref<16x256xf32, #tpu.memory_space<vmem>>, vector<8x256xf32>
    %c8 = arith.constant 8 : index
    %c0_1 = arith.constant 0 : index
    %1 = vector.load %arg0[%c8, %c0_1] : memref<16x256xf32, #tpu.memory_space<vmem>>, vector<8x256xf32>
    %c0_2 = arith.constant 0 : index
    %c0_3 = arith.constant 0 : index
    %2 = vector.load %arg1[%c0_2, %c0_3] : memref<64x7xf32, #tpu.memory_space<vmem>>, vector<64x1xf32>
    %c0_4 = arith.constant 0 : index
    %c1 = arith.constant 1 : index
    %3 = vector.load %arg1[%c0_4, %c1] : memref<64x7xf32, #tpu.memory_space<vmem>>, vector<64x1xf32>
    %c0_5 = arith.constant 0 : index
    %c2 = arith.constant 2 : index
    %4 = vector.load %arg1[%c0_5, %c2] : memref<64x7xf32, #tpu.memory_space<vmem>>, vector<64x1xf32>
    %c0_6 = arith.constant 0 : index
    %c3 = arith.constant 3 : index
    %5 = vector.load %arg1[%c0_6, %c3] : memref<64x7xf32, #tpu.memory_space<vmem>>, vector<64x1xf32>
    %c0_7 = arith.constant 0 : index
    %c4 = arith.constant 4 : index
    %6 = vector.load %arg1[%c0_7, %c4] : memref<64x7xf32, #tpu.memory_space<vmem>>, vector<8x1xf32>
    %c0_8 = arith.constant 0 : index
    %c5 = arith.constant 5 : index
    %7 = vector.load %arg1[%c0_8, %c5] : memref<64x7xf32, #tpu.memory_space<vmem>>, vector<8x1xf32>
    %c0_9 = arith.constant 0 : index
    %c6 = arith.constant 6 : index
    %8 = vector.load %arg1[%c0_9, %c6] : memref<64x7xf32, #tpu.memory_space<vmem>>, vector<8x1xf32>
    %c0_10 = arith.constant 0 : index
    %c0_11 = arith.constant 0 : index
    %9 = vector.load %arg2[%c0_10, %c0_11] : memref<328x64xf32, #tpu.memory_space<vmem>>, vector<64x64xf32>
    %c64 = arith.constant 64 : index
    %c0_12 = arith.constant 0 : index
    %10 = vector.load %arg2[%c64, %c0_12] : memref<328x64xf32, #tpu.memory_space<vmem>>, vector<64x64xf32>
    %c128 = arith.constant 128 : index
    %c0_13 = arith.constant 0 : index
    %11 = vector.load %arg2[%c128, %c0_13] : memref<328x64xf32, #tpu.memory_space<vmem>>, vector<64x64xf32>
    %c192 = arith.constant 192 : index
    %c0_14 = arith.constant 0 : index
    %12 = vector.load %arg2[%c192, %c0_14] : memref<328x64xf32, #tpu.memory_space<vmem>>, vector<64x64xf32>
    %c256 = arith.constant 256 : index
    %c0_15 = arith.constant 0 : index
    %13 = vector.load %arg2[%c256, %c0_15] : memref<328x64xf32, #tpu.memory_space<vmem>>, vector<64x8xf32>
    %c320 = arith.constant 320 : index
    %c0_16 = arith.constant 0 : index
    %14 = vector.load %arg2[%c320, %c0_16] : memref<328x64xf32, #tpu.memory_space<vmem>>, vector<8x64xf32>
    %15 = vector.broadcast %7 : vector<8x1xf32> to vector<8x256xf32>
    %16 = arith.mulf %15, %0 : vector<8x256xf32>
    %17 = vector.broadcast %8 : vector<8x1xf32> to vector<8x256xf32>
    %18 = arith.mulf %17, %1 : vector<8x256xf32>
    %19 = arith.addf %16, %18 : vector<8x256xf32>
    %cst = arith.constant dense<0.000000e+00> : vector<64x1xf32>
    %20 = tpu.matmul %9, %2, %cst {dimension_numbers = #tpu.dot_dimension_numbers<[1], [0], [0], [1], [0, 0, 1, 1], [], []>} : vector<64x64xf32>, vector<64x1xf32>, vector<64x1xf32> -> vector<64x1xf32>
    %21 = arith.addf %20, %4 : vector<64x1xf32>
    %22 = math.tanh %21 : vector<64x1xf32>
    %cst_17 = arith.constant dense<0.000000e+00> : vector<64x1xf32>
    %23 = tpu.matmul %10, %22, %cst_17 {dimension_numbers = #tpu.dot_dimension_numbers<[1], [0], [0], [1], [0, 0, 1, 1], [], []>} : vector<64x64xf32>, vector<64x1xf32>, vector<64x1xf32> -> vector<64x1xf32>
    %cst_18 = arith.constant dense<0.000000e+00> : vector<64x1xf32>
    %24 = tpu.matmul %11, %3, %cst_18 {dimension_numbers = #tpu.dot_dimension_numbers<[1], [0], [0], [1], [0, 0, 1, 1], [], []>} : vector<64x64xf32>, vector<64x1xf32>, vector<64x1xf32> -> vector<64x1xf32>
    %cst_19 = arith.constant dense<0.000000e+00> : vector<64x1xf32>
    %25 = tpu.matmul %12, %23, %cst_19 {dimension_numbers = #tpu.dot_dimension_numbers<[1], [0], [0], [1], [0, 0, 1, 1], [], []>} : vector<64x64xf32>, vector<64x1xf32>, vector<64x1xf32> -> vector<64x1xf32>
    %26 = arith.addf %24, %25 : vector<64x1xf32>
    %27 = arith.addf %26, %5 : vector<64x1xf32>
    %cst_20 = arith.constant dense<0.000000e+00> : vector<64x256xf32>
    %28 = tpu.matmul %13, %19, %cst_20 {dimension_numbers = #tpu.dot_dimension_numbers<[1], [0], [0], [1], [0, 0, 1, 1], [], []>} : vector<64x8xf32>, vector<8x256xf32>, vector<64x256xf32> -> vector<64x256xf32>
    %29 = vector.broadcast %27 : vector<64x1xf32> to vector<64x256xf32>
    %30 = arith.addf %28, %29 : vector<64x256xf32>
    %cst_21 = arith.constant 0.000000e+00 : f32
    %31 = vector.broadcast %cst_21 : f32 to vector<64x256xf32>
    %32 = arith.maximumf %30, %31 : vector<64x256xf32>
    %cst_22 = arith.constant dense<0.000000e+00> : vector<8x256xf32>
    %33 = tpu.matmul %14, %32, %cst_22 {dimension_numbers = #tpu.dot_dimension_numbers<[1], [0], [0], [1], [0, 0, 1, 1], [], []>} : vector<8x64xf32>, vector<64x256xf32>, vector<8x256xf32> -> vector<8x256xf32>
    %34 = vector.broadcast %6 : vector<8x1xf32> to vector<8x256xf32>
    %35 = arith.addf %33, %34 : vector<8x256xf32>
    %36 = arith.subf %35, %1 : vector<8x256xf32>
    %37 = arith.mulf %36, %36 : vector<8x256xf32>
    %c0_23 = arith.constant 0 : index
    %c0_24 = arith.constant 0 : index
    %38 = vector.load %arg3[%c0_23, %c0_24] : memref<8x256xf32, #tpu.memory_space<vmem>>, vector<8x256xf32>
    tpu.vector_store %arg3[%c0_23, %c0_24], %37 {strides = array<i32>} : memref<8x256xf32, #tpu.memory_space<vmem>>, vector<8x256xf32>,
    return
  }
}

</mosaic_0001>

<bundles_post_ra>
// kernel: tpu_custom_call.1
= control target key start
LH: loop header
LB: loop body
LE: loop exit
PB: predicated region body
PF: predicated region fallthrough
CT: control target
= control target key end

     0   :  { %s814_s18 = smov 126   ;;  %s1140_s0 = inlined_call_operand.vmem [shape: f32[16,256], index: 0, kind: input, shape index: {}]   ;;  %s1141_s1 = inlined_call_operand.vmem [shape: f32[64,7], index: 1, kind: input, shape index: {}]   ;;  %s1142_s2 = inlined_call_operand.vmem [shape: f32[328,64], index: 2, kind: input, shape index: {}]   ;;  %s1143_s3 = inlined_call_operand.hbm [shape: f32[8,256], index: 3, kind: output, shape index: {}]  }
   0x1   :  { %v845_v0 = vld [vmem:[%s1141_s1 + $0x38] sm:$0xff]  ;;  %v850_v1 = vld [vmem:[%s1141_s1 + $0x30] sm:$0xff]  ;;  %v857_v2 = vld [vmem:[%s1141_s1 + $0x28] sm:$0xff] }
   0x2   :  { %147 = vmatpush.msra.mxu0 %v845_v0  ;;  %721 = vmatpush.msra.mxu2 %v845_v0  ;;  %v866_v3 = vld [vmem:[%s1141_s1 + $0x20] sm:$0xff]  ;;  %v875_v4 = vld [vmem:[%s1141_s1 + $0x18] sm:$0xff] }
   0x3   :  { %100 = vrot.lane.b32.xlu1 %v857_v2, %s814_s18  ;;  %104 = vrot.lane.b32.xlu0 %v845_v0, %s814_s18 }
   0x4   :  { %148 = vmatpush.msra.mxu0 %v850_v1  ;;  %722 = vmatpush.msra.mxu2 %v850_v1 }
   0x6   :  { %149 = vmatpush.msra.mxu0 %v857_v2  ;;  %723 = vmatpush.msra.mxu2 %v857_v2 }
   0x7   :  { %8 = vsyncpa [#allocation3], 0  ;;  %96 = vrot.lane.b32.xlu2 %v875_v4, %s814_s18  ;;  %v884_v5 = vld [vmem:[%s1141_s1 + $0x10] sm:$0xff]  ;;  %v891_v6 = vld [vmem:[%s1141_s1 + $0x8] sm:$0xff]  ;;  %vm114_vm0 = vcmask 523264   ;;  %v750_v50 = vpack.i.bf16 %v866_v3, %v857_v2  ;;  %v745_v52 = vpack.i.bf16 %v850_v1, %v845_v0  ;;  %s815_s21 = smov 127  }
   0x8   :  { %150 = vmatpush.msra.mxu0 %v866_v3  ;;  %724 = vmatpush.msra.mxu2 %v866_v3  ;;  %v900_v7 = vld [vmem:[%s1141_s1] sm:$0xff]  ;;  %v32_v9 = vld [vmem:[%s1142_s2 + $0x28] sm:$0xff]  ;;  %v33_v11 = vld [vmem:[%s1142_s2 + $0x30] sm:$0xff]  ;;  %v755_v51 = vpack.i.bf16 %v884_v5, %v875_v4  ;;  %s816_s6 = smov 125   ;;  %v817_v60 = vmov 6   ;;  %v818_v61 = vmov 5  }
   0x9   :  { %v27_v8 = vld [vmem:[%s1142_s2] sm:$0xff]  ;;  %v28_v10 = vld [vmem:[%s1142_s2 + $0x8] sm:$0xff]  ;;  %v29_v12 = vld [vmem:[%s1142_s2 + $0x10] sm:$0xff]  ;;  %v760_v55 = vpack.i.bf16 %v900_v7, %v891_v6  ;;  %766 = vset.pattern.permute.xlu1 %v817_v60  ;;  %765 = vset.pattern.permute.xlu0 %v818_v61  ;;  %vm479_vm1 = vcmask 64512   ;;  %v819_v60 = vmov 0   ;;  %s821_s8 = smov [#allocation2]  }
   0xa   :  { %151 = vmatpush.msra.mxu0 %v875_v4  ;;  %725 = vmatpush.msra.mxu2 %v875_v4  ;;  %v34_v13 = vld [vmem:[%s1142_s2 + $0x38] sm:$0xff]  ;;  %v31_v15 = vld [vmem:[%s1142_s2 + $0x20] sm:$0xff]  ;;  %v40_v48 = vld [vmem:[%s1142_s2 + $0x68] sm:$0xff]  ;;  %s660_s9 = sshll.u32 %s821_s8, 4  ;;  %s661_s9 = int_to_ptr.vmem [resolvable:$true] %s660_s9 }
   0xb   :  { %98 = vrot.lane.b32.xlu1 %v866_v3, %s814_s18  ;;  %102 = vrot.lane.b32.xlu0 %v850_v1, %s814_s18  ;;  %v30_v14 = vld [vmem:[%s1142_s2 + $0x18] sm:$0xff]  ;;  %v35_v47 = vld [vmem:[%s1142_s2 + $0x40] sm:$0xff] }
   0xc   :  { %152 = vmatpush.msra.mxu0 %v884_v5  ;;  %726 = vmatpush.msra.mxu2 %v884_v5  ;;  %v36_v53 = vld [vmem:[%s1142_s2 + $0x48] sm:$0xff]  ;;  %v41_v54 = vld [vmem:[%s1142_s2 + $0x70] sm:$0xff]  ;;  %v42_v57 = vld [vmem:[%s1142_s2 + $0x78] sm:$0xff] }
   0xd   :  { %v37_v56 = vld [vmem:[%s1142_s2 + $0x50] sm:$0xff]  ;;  %v38_v58 = vld [vmem:[%s1142_s2 + $0x58] sm:$0xff]  ;;  %v39_v59 = vld [vmem:[%s1142_s2 + $0x60] sm:$0xff]  ;;  %769 = vset.pattern.permute.xlu2 %v819_v60 }
   0xe   :  { %153 = vmatpush.msra.mxu0 %v891_v6  ;;  %727 = vmatpush.msra.mxu2 %v891_v6 }
   0xf   :  { %94 = vrot.lane.b32.xlu2 %v884_v5, %s814_s18 }
  0x10   :  { %154 = vmatpush.msra.mxu0 %v900_v7  ;;  %728 = vmatpush.msra.mxu2 %v900_v7 }
  0x11   :  { %671 = vmatmul.msk.f32.vlgmr.msra.gmra.mxu0 %vm114_vm0, %v27_v8  ;;  %676 = vmatmul.msk.f32.vlgmr.msra.gmra.mxu2 %vm114_vm0, %v32_v9 }
  0x13   :  { %90 = vrot.lane.b32.xlu1 %v900_v7, %s814_s18  ;;  %92 = vrot.lane.b32.xlu0 %v891_v6, %s814_s18 }
  0x17   :  { %746 = vrot.lane.b32.xlu2 %v745_v52, %s815_s21  ;;  %v64_v52 = vld [vmem:[%s1142_s2 + $0x128] sm:$0xff] }
  0x19   :  { %672 = vmatmul.msk.f32.gmra.mxu0 %vm114_vm0, %v28_v10  ;;  %677 = vmatmul.msk.f32.gmra.mxu2 %vm114_vm0, %v33_v11 }
  0x1b   :  { %751 = vrot.lane.b32.xlu0 %v750_v50, %s815_s21  ;;  %756 = vrot.lane.b32.xlu1 %v755_v51, %s815_s21  ;;  %v62_v50 = vld [vmem:[%s1142_s2 + $0x118] sm:$0xff]  ;;  %v63_v51 = vld [vmem:[%s1142_s2 + $0x120] sm:$0xff] }
  0x1f   :  { %761 = vrot.lane.b32.xlu2 %v760_v55, %s815_s21  ;;  %v66_v55 = vld [vmem:[%s1142_s2 + $0x138] sm:$0xff] }
  0x21   :  { %673 = vmatmul.msk.f32.gmra.mxu0 %vm114_vm0, %v29_v12  ;;  %678 = vmatmul.msk.f32.gmra.mxu2 %vm114_vm0, %v34_v13 }
  0x23   :  { %70 = vperm.xlu0 %765, %v900_v7   ;;  %76 = vperm.xlu1 %766, %v900_v7  }
  0x27   :  { %421 = vrot.lane.b32.xlu2 %v845_v0, %s816_s6 }
  0x29   :  { %674 = vmatmul.msk.f32.gmra.mxu0 %vm114_vm0, %v30_v14 }
  0x2b   :  { %419 = vrot.lane.b32.xlu1 %v850_v1, %s816_s6  ;;  %415 = vrot.lane.b32.xlu0 %v866_v3, %s816_s6 }
  0x2c   :  { %768 = vset.pattern.permute.xlu1 %v819_v60  ;;  %767 = vset.pattern.permute.xlu0 %v819_v60 }
  0x2f   :  { %417 = vrot.lane.b32.xlu2 %v857_v2, %s816_s6 }
  0x31   :  { %675 = vmatmul.msk.f32.gmra.mxu0 %vm114_vm0, %v31_v15 }
  0x33   :  { %413 = vrot.lane.b32.xlu1 %v875_v4, %s816_s6  ;;  %409 = vrot.lane.b32.xlu0 %v891_v6, %s816_s6  ;;  %v44_v6 = vld [vmem:[%s1142_s2 + $0x88] sm:$0xff] }
  0x37   :  { %411 = vrot.lane.b32.xlu2 %v884_v5, %s816_s6 }
  0x3b   :  { %407 = vrot.lane.b32.xlu1 %v900_v7, %s816_s6 }
  0x61   :  { %v97_v23 = vpop.permute.xlu2 %96 }
  0x69   :  { %v95_v32 = vpop.permute.xlu2 %94 }
  0x71   :  { %v747_v62 = vpop.permute.xlu2 %746 }
  0x72   :  { %v748_v63 = vunpack.i.l.bf16 %v747_v62  ;;  %v749_v9 = vunpack.i.h.bf16 %v747_v62 }
  0x75   :  { %v105_v19 = vpop.permute.xlu0 %104  ;;  %v101_v21 = vpop.permute.xlu1 %100 }
  0x79   :  { %v762_v12 = vpop.permute.xlu2 %761 }
  0x7a   :  { %v763_v1 = vunpack.i.l.bf16 %v762_v12  ;;  %v764_v3 = vunpack.i.h.bf16 %v762_v12 }
  0x7d   :  { %v103_v24 = vpop.permute.xlu0 %102  ;;  %v99_v30 = vpop.permute.xlu1 %98 }
  0x85   :  { %v93_v37 = vpop.permute.xlu0 %92  ;;  %v91_v40 = vpop.permute.xlu1 %90 }
  0x8d   :  { %v752_v8 = vpop.permute.xlu0 %751  ;;  %v757_v5 = vpop.permute.xlu1 %756 }
  0x8e   :  { %v156_v16 = vpop.f32.mrf.mxu0  ;;  %v753_v0 = vunpack.i.l.bf16 %v752_v8  ;;  %v754_v2 = vunpack.i.h.bf16 %v752_v8  ;;  %v758_v10 = vunpack.i.l.bf16 %v757_v5  ;;  %v759_v13 = vunpack.i.h.bf16 %v757_v5 }
  0x8f   :  { %v157_v42 = vadd.f32 %v156_v16, %v91_v40  ;;  %v43_v16 = vld [vmem:[%s1142_s2 + $0x80] sm:$0xff] }
  0x94   :  { %v171_v17 = vpop.f32.mrf.mxu2 }
  0x95   :  { %v172_v29 = vadd.f32 %v171_v17, %v101_v21  ;;  %v77_v40 = vpop.permute.xlu1 %76 }
  0x96   :  { %v159_v18 = vpop.f32.mrf.mxu0 }
  0x97   :  { %v160_v41 = vadd.f32 %v159_v18, %v93_v37  ;;  %v1077_v37 = vld [vmem:[%s1140_s0 + $0x10] sm:$0xff] }
  0x9c   :  { %v174_v20 = vpop.f32.mrf.mxu2 }
  0x9d   :  { %v175_v26 = vadd.f32 %v174_v20, %v103_v24  ;;  %v45_v20 = vld [vmem:[%s1142_s2 + $0x90] sm:$0xff]  ;;  %v47_v24 = vld [vmem:[%s1142_s2 + $0xa0] sm:$0xff]  ;;  %v420_v5 = vpop.permute.xlu1 %419 }
  0x9e   :  { %v162_v22 = vpop.f32.mrf.mxu0 }
  0x9f   :  { %v163_v39 = vadd.f32 %v162_v22, %v95_v32  ;;  %v46_v22 = vld [vmem:[%s1142_s2 + $0x98] sm:$0xff]  ;;  %v56_v32 = vld [vmem:[%s1142_s2 + $0xe8] sm:$0xff] }
  0xa4   :  { %v177_v25 = vpop.f32.mrf.mxu2 }
  0xa5   :  { %v178_v27 = vadd.f32 %v177_v25, %v105_v19  ;;  %v52_v25 = vld [vmem:[%s1142_s2 + $0xc8] sm:$0xff] }
  0xa6   :  { %v165_v28 = vpop.f32.mrf.mxu0 }
  0xa7   :  { %772 = vtanh.f32 %v178_v27  ;;  %v166_v35 = vadd.f32 %v165_v28, %v97_v23  ;;  %v51_v23 = vld [vmem:[%s1142_s2 + $0xc0] sm:$0xff]  ;;  %v53_v27 = vld [vmem:[%s1142_s2 + $0xd0] sm:$0xff] }
  0xa8   :  { %774 = vtanh.f32 %v175_v26  ;;  %v48_v26 = vld [vmem:[%s1142_s2 + $0xa8] sm:$0xff]  ;;  %v49_v28 = vld [vmem:[%s1142_s2 + $0xb0] sm:$0xff] }
  0xa9   :  { %776 = vtanh.f32 %v172_v29  ;;  %v54_v29 = vld [vmem:[%s1142_s2 + $0xd8] sm:$0xff] }
  0xad   :  { %v773_v31 = vpop.eup %772 }
  0xae   :  { %v168_v33 = vpop.f32.mrf.mxu0  ;;  %220 = vmatpush.msra.mxu1 %v773_v31  ;;  %729 = vmatpush.msra.mxu3 %v773_v31  ;;  %v775_v34 = vpop.eup %774  ;;  %v55_v31 = vld [vmem:[%s1142_s2 + $0xe0] sm:$0xff] }
  0xaf   :  { %v169_v36 = vadd.f32 %v168_v33, %v99_v30  ;;  %v777_v38 = vpop.eup %776  ;;  %v50_v30 = vld [vmem:[%s1142_s2 + $0xb8] sm:$0xff]  ;;  %v57_v33 = vld [vmem:[%s1142_s2 + $0xf0] sm:$0xff] }
  0xb0   :  { %221 = vmatpush.msra.mxu1 %v775_v34  ;;  %730 = vmatpush.msra.mxu3 %v775_v34  ;;  %v58_v34 = vld [vmem:[%s1142_s2 + $0xf8] sm:$0xff] }
  0xb1   :  { %778 = vtanh.f32 %v169_v36  ;;  %v16_v36 = vld [vmem:[%s1140_s0 + $0x8] sm:$0xff] }
  0xb2   :  { %222 = vmatpush.msra.mxu1 %v777_v38  ;;  %731 = vmatpush.msra.mxu3 %v777_v38  ;;  %780 = vtanh.f32 %v166_v35  ;;  %v15_v35 = vld [vmem:[%s1140_s0] sm:$0xff]  ;;  %v1082_v38 = vld [vmem:[%s1140_s0 + $0x18] sm:$0xff] }
  0xb3   :  { %782 = vtanh.f32 %v163_v39  ;;  %v71_v39 = vpop.permute.xlu0 %70 }
  0xb4   :  { %784 = vtanh.f32 %v160_v41  ;;  %v73_v41 = vmul.f32 %v71_v39, %v15_v35 }
  0xb5   :  { %786 = vtanh.f32 %v157_v42  ;;  %v74_v42 = vmul.f32 %v71_v39, %v16_v36 }
  0xb7   :  { %v779_v43 = vpop.eup %778 }
  0xb8   :  { %223 = vmatpush.msra.mxu1 %v779_v43  ;;  %732 = vmatpush.msra.mxu3 %v779_v43  ;;  %v781_v44 = vpop.eup %780  ;;  %v79_v43 = vmul.f32 %v77_v40, %v1077_v37 }
  0xb9   :  { %v783_v45 = vpop.eup %782 }
  0xba   :  { %224 = vmatpush.msra.mxu1 %v781_v44  ;;  %733 = vmatpush.msra.mxu3 %v781_v44  ;;  %v785_v46 = vpop.eup %784  ;;  %v80_v44 = vmul.f32 %v77_v40, %v1082_v38 }
  0xbb   :  { %v787_v49 = vpop.eup %786 }
  0xbc   :  { %225 = vmatpush.msra.mxu1 %v783_v45  ;;  %734 = vmatpush.msra.mxu3 %v783_v45  ;;  %v81_v45 = vadd.f32 %v79_v43, %v73_v41 }
  0xbe   :  { %226 = vmatpush.msra.mxu1 %v785_v46  ;;  %735 = vmatpush.msra.mxu3 %v785_v46  ;;  %v82_v46 = vadd.f32 %v80_v44, %v74_v42 }
  0xbf   :  { %519 = vmatpush.msrb.mxu0 %v81_v45 }
  0xc0   :  { %227 = vmatpush.msra.mxu1 %v787_v49  ;;  %736 = vmatpush.msra.mxu3 %v787_v49  ;;  %v61_v49 = vld [vmem:[%s1142_s2 + $0x110] sm:$0xff] }
  0xc1   :  { %679 = vmatmul.msk.f32.vlgmr.msra.gmra.mxu1 %vm114_vm0, %v35_v47  ;;  %684 = vmatmul.msk.f32.vlgmr.msra.gmra.mxu3 %vm114_vm0, %v40_v48  ;;  %v59_v47 = vld [vmem:[%s1142_s2 + $0x100] sm:$0xff]  ;;  %v60_v48 = vld [vmem:[%s1142_s2 + $0x108] sm:$0xff] }
  0xc2   :  { %374 = vmatpush.msrb.mxu3 %v748_v63  ;;  %560 = vmatpush.msrb.mxu1 %v82_v46 }
  0xc3   :  { %703 = vmatmul.msk.f32.vlgmr.msrb.gmra.mxu0 %vm479_vm1, %v59_v47 }
  0xc4   :  { %375 = vmatpush.msrb.mxu3 %v749_v9  ;;  %v422_v9 = vpop.permute.xlu2 %421 }
  0xc6   :  { %376 = vmatpush.msrb.mxu3 %v753_v0 }
  0xc8   :  { %377 = vmatpush.msrb.mxu3 %v754_v2 }
  0xc9   :  { %680 = vmatmul.msk.f32.gmra.mxu1 %vm114_vm0, %v36_v53  ;;  %685 = vmatmul.msk.f32.gmra.mxu3 %vm114_vm0, %v41_v54  ;;  %v65_v54 = vld [vmem:[%s1142_s2 + $0x130] sm:$0xff] }
  0xca   :  { %378 = vmatpush.msrb.mxu3 %v758_v10 }
  0xcb   :  { %704 = vmatmul.msk.f32.gmra.mxu0 %vm479_vm1, %v60_v48 }
  0xcc   :  { %379 = vmatpush.msrb.mxu3 %v759_v13  ;;  %v418_v12 = vpop.permute.xlu2 %417 }
  0xce   :  { %380 = vmatpush.msrb.mxu3 %v763_v1 }
  0xd0   :  { %381 = vmatpush.msrb.mxu3 %v764_v3  ;;  %v414_v3 = vpop.permute.xlu1 %413 }
  0xd1   :  { %681 = vmatmul.msk.f32.gmra.mxu1 %vm114_vm0, %v37_v56  ;;  %686 = vmatmul.msk.f32.gmra.mxu3 %vm114_vm0, %v42_v57 }
  0xd3   :  { %705 = vmatmul.msk.f32.gmra.mxu0 %vm479_vm1, %v61_v49 }
  0xd9   :  { %682 = vmatmul.msk.f32.gmra.mxu1 %vm114_vm0, %v38_v58  ;;  %695 = vmatmul.msk.f32.vlgmr.msrb.gmra.mxu3 %vm114_vm0, %v43_v16 }
  0xdb   :  { %706 = vmatmul.msk.f32.gmra.mxu0 %vm479_vm1, %v62_v50 }
  0xe1   :  { %683 = vmatmul.msk.f32.gmra.mxu1 %vm114_vm0, %v39_v59  ;;  %696 = vmatmul.msk.f32.gmra.mxu3 %vm114_vm0, %v44_v6 }
  0xe3   :  { %707 = vmatmul.msk.f32.gmra.mxu0 %vm479_vm1, %v63_v51 }
  0xe9   :  { %697 = vmatmul.msk.f32.gmra.mxu3 %vm114_vm0, %v45_v20  ;;  %711 = vmatmul.msk.f32.vlgmr.msrb.gmra.mxu1 %vm479_vm1, %v59_v47  ;;  %v408_v20 = vpop.permute.xlu1 %407 }
  0xeb   :  { %708 = vmatmul.msk.f32.gmra.mxu0 %vm479_vm1, %v64_v52 }
  0xf1   :  { %698 = vmatmul.msk.f32.gmra.mxu3 %vm114_vm0, %v46_v22  ;;  %712 = vmatmul.msk.f32.gmra.mxu1 %vm479_vm1, %v60_v48 }
  0xf3   :  { %709 = vmatmul.msk.f32.gmra.mxu0 %vm479_vm1, %v65_v54 }
  0xf9   :  { %699 = vmatmul.msk.f32.gmra.mxu3 %vm114_vm0, %v47_v24  ;;  %713 = vmatmul.msk.f32.gmra.mxu1 %vm479_vm1, %v61_v49 }
  0xfb   :  { %710 = vmatmul.msk.f32.gmra.mxu0 %vm479_vm1, %v66_v55 }
 0x101   :  { %700 = vmatmul.msk.f32.gmra.mxu3 %vm114_vm0, %v48_v26  ;;  %714 = vmatmul.msk.f32.gmra.mxu1 %vm479_vm1, %v62_v50 }
 0x109   :  { %701 = vmatmul.msk.f32.gmra.mxu3 %vm114_vm0, %v49_v28  ;;  %715 = vmatmul.msk.f32.gmra.mxu1 %vm479_vm1, %v63_v51 }
 0x111   :  { %702 = vmatmul.msk.f32.gmra.mxu3 %vm114_vm0, %v50_v30  ;;  %716 = vmatmul.msk.f32.gmra.mxu1 %vm479_vm1, %v64_v52 }
 0x119   :  { %717 = vmatmul.msk.f32.gmra.mxu1 %vm479_vm1, %v65_v54 }
 0x121   :  { %718 = vmatmul.msk.f32.gmra.mxu1 %vm479_vm1, %v66_v55 }
 0x13e   :  { %v229_v11 = vpop.f32.mrf.mxu1 }
 0x144   :  { %v244_v14 = vpop.f32.mrf.mxu3 }
 0x146   :  { %v232_v15 = vpop.f32.mrf.mxu1 }
 0x14c   :  { %v247_v4 = vpop.f32.mrf.mxu3 }
 0x14e   :  { %v235_v17 = vpop.f32.mrf.mxu1 }
 0x154   :  { %v250_v18 = vpop.f32.mrf.mxu3 }
 0x155   :  { %285 = vmatpush.msrb.mxu2 %v250_v18 }
 0x156   :  { %v238_v19 = vpop.f32.mrf.mxu1 }
 0x157   :  { %286 = vmatpush.msrb.mxu2 %v247_v4 }
 0x159   :  { %287 = vmatpush.msrb.mxu2 %v244_v14  ;;  %v416_v14 = vpop.permute.xlu0 %415 }
 0x15c   :  { %v383_v53 = vpop.f32.mrf.mxu3 }
 0x15e   :  { %v241_v21 = vpop.f32.mrf.mxu1 }
 0x15f   :  { %288 = vmatpush.msrb.mxu2 %v241_v21 }
 0x161   :  { %289 = vmatpush.msrb.mxu2 %v238_v19  ;;  %v410_v22 = vpop.permute.xlu0 %409 }
 0x163   :  { %290 = vmatpush.msrb.mxu2 %v235_v17 }
 0x164   :  { %v386_v56 = vpop.f32.mrf.mxu3 }
 0x165   :  { %291 = vmatpush.msrb.mxu2 %v232_v15 }
 0x167   :  { %292 = vmatpush.msrb.mxu2 %v229_v11 }
 0x168   :  { %687 = vmatmul.msk.f32.vlgmr.msrb.gmra.mxu2 %vm114_vm0, %v51_v23 }
 0x16c   :  { %v389_v58 = vpop.f32.mrf.mxu3 }
 0x170   :  { %688 = vmatmul.msk.f32.gmra.mxu2 %vm114_vm0, %v52_v25 }
 0x174   :  { %v392_v61 = vpop.f32.mrf.mxu3 }
 0x178   :  { %689 = vmatmul.msk.f32.gmra.mxu2 %vm114_vm0, %v53_v27 }
 0x17c   :  { %v395_v8 = vpop.f32.mrf.mxu3 }
 0x180   :  { %690 = vmatmul.msk.f32.gmra.mxu2 %vm114_vm0, %v54_v29 }
 0x184   :  { %v398_v2 = vpop.f32.mrf.mxu3 }
 0x188   :  { %691 = vmatmul.msk.f32.gmra.mxu2 %vm114_vm0, %v55_v31  ;;  %v412_v31 = vpop.permute.xlu2 %411 }
 0x18c   :  { %v401_v1 = vpop.f32.mrf.mxu3 }
 0x190   :  { %692 = vmatmul.msk.f32.gmra.mxu2 %vm114_vm0, %v56_v32 }
 0x194   :  { %v404_v18 = vpop.f32.mrf.mxu3 }
 0x198   :  { %693 = vmatmul.msk.f32.gmra.mxu2 %vm114_vm0, %v57_v33  ;;  %v521_v33 = vpop.f32.mrf.mxu0 }
 0x1a0   :  { %694 = vmatmul.msk.f32.gmra.mxu2 %vm114_vm0, %v58_v34  ;;  %v1126_v34 = vpop.f32.mrf.mxu1  ;;  %v524_v35 = vpop.f32.mrf.mxu0 }
 0x1a8   :  { %v565_v36 = vpop.f32.mrf.mxu1  ;;  %v527_v39 = vpop.f32.mrf.mxu0 }
 0x1b0   :  { %v568_v40 = vpop.f32.mrf.mxu1  ;;  %v530_v41 = vpop.f32.mrf.mxu0 }
 0x1b8   :  { %v571_v42 = vpop.f32.mrf.mxu1  ;;  %v533_v43 = vpop.f32.mrf.mxu0 }
 0x1c0   :  { %v574_v44 = vpop.f32.mrf.mxu1  ;;  %v536_v45 = vpop.f32.mrf.mxu0 }
 0x1c8   :  { %v577_v46 = vpop.f32.mrf.mxu1  ;;  %v539_v47 = vpop.f32.mrf.mxu0 }
 0x1d0   :  { %v580_v48 = vpop.f32.mrf.mxu1  ;;  %v542_v49 = vpop.f32.mrf.mxu0 }
 0x1d8   :  { %v583_v50 = vpop.f32.mrf.mxu1 }
 0x1eb   :  { %v294_v57 = vpop.f32.mrf.mxu2 }
 0x1ec   :  { %v384_v19 = vadd.f32 %v383_v53, %v294_v57 }
 0x1ee   :  { %v431_v25 = vadd.f32 %v408_v20, %v384_v19 }
 0x1f3   :  { %v297_v59 = vpop.f32.mrf.mxu2 }
 0x1f4   :  { %v387_v21 = vadd.f32 %v386_v56, %v297_v59  ;;  %v820_v56 = vmov 4  }
 0x1f6   :  { %v432_v26 = vadd.f32 %v410_v22, %v387_v21 }
 0x1fb   :  { %v300_v62 = vpop.f32.mrf.mxu2 }
 0x1fc   :  { %v390_v30 = vadd.f32 %v389_v58, %v300_v62 }
 0x1fe   :  { %v433_v32 = vadd.f32 %v412_v31, %v390_v30 }
 0x203   :  { %v303_v63 = vpop.f32.mrf.mxu2 }
 0x204   :  { %v393_v15 = vadd.f32 %v392_v61, %v303_v63 }
 0x206   :  { %v434_v17 = vadd.f32 %v414_v3, %v393_v15 }
 0x20b   :  { %v306_v0 = vpop.f32.mrf.mxu2 }
 0x20c   :  { %v396_v28 = vadd.f32 %v395_v8, %v306_v0 }
 0x20e   :  { %v435_v29 = vadd.f32 %v416_v14, %v396_v28 }
 0x213   :  { %v309_v10 = vpop.f32.mrf.mxu2 }
 0x214   :  { %v399_v11 = vadd.f32 %v398_v2, %v309_v10 }
 0x216   :  { %v436_v13 = vadd.f32 %v418_v12, %v399_v11 }
 0x218   :  { %466 = vperm.xlu1 %768, %v436_v13  }
 0x21b   :  { %v312_v16 = vpop.f32.mrf.mxu2 }
 0x21c   :  { %v402_v4 = vadd.f32 %v401_v1, %v312_v16 }
 0x21e   :  { %v437_v6 = vadd.f32 %v420_v5, %v402_v4 }
 0x220   :  { %456 = vperm.xlu1 %768, %v434_v17   ;;  %471 = vperm.xlu0 %767, %v437_v6  }
 0x223   :  { %v315_v23 = vpop.f32.mrf.mxu2 }
 0x224   :  { %v405_v24 = vadd.f32 %v404_v18, %v315_v23 }
 0x226   :  { %v438_v27 = vadd.f32 %v422_v9, %v405_v24 }
 0x228   :  { %441 = vperm.xlu1 %768, %v431_v25   ;;  %446 = vperm.xlu0 %767, %v432_v26  }
 0x229   :  { %476 = vperm.xlu2 %769, %v438_v27   ;;  %v67_v27 = vld [vmem:[%s1142_s2 + $0x140] sm:$0xff]  ;;  %s662_s2 = sshll.u32 %s1143_s3, 4  ;;  %s663_s2 = int_to_ptr.hbm [resolvable:$true] %s662_s2 }
 0x230   :  { %771 = vset.pattern.permute.xlu0 %v820_v56 }
 0x231   :  { %461 = vperm.xlu2 %769, %v435_v29  }
 0x239   :  { %451 = vperm.xlu2 %769, %v433_v32  }
 0x241   :  { %770 = vset.pattern.permute.xlu2 %v820_v56 }
 0x242   :  { %603 = vperm.xlu2 %770, %v900_v7  }
 0x283   :  { %v477_v51 = vpop.permute.xlu2 %476 }
 0x284   :  { %v543_v52 = vadd.f32 %v542_v49, %v477_v51  ;;  %v584_v53 = vadd.f32 %v583_v50, %v477_v51 }
 0x286   :  { %v600_v54 = vmax.f32 %v543_v52, 0.0  ;;  %v601_v55 = vmax.f32 %v584_v53, 0.0 }
 0x288   :  { %617 = vmatpush.msra.mxu2 %v600_v54  ;;  %637 = vmatpush.msra.mxu3 %v601_v55 }
 0x28a   :  { %v467_v57 = vpop.permute.xlu1 %466 }
 0x28b   :  { %v462_v58 = vpop.permute.xlu2 %461  ;;  %v537_v61 = vadd.f32 %v536_v45, %v467_v57  ;;  %v578_v62 = vadd.f32 %v577_v46, %v467_v57 }
 0x28c   :  { %v534_v9 = vadd.f32 %v533_v43, %v462_v58  ;;  %v575_v5 = vadd.f32 %v574_v44, %v462_v58 }
 0x28d   :  { %v596_v11 = vmax.f32 %v537_v61, 0.0  ;;  %v597_v12 = vmax.f32 %v578_v62, 0.0 }
 0x28e   :  { %v594_v1 = vmax.f32 %v534_v9, 0.0  ;;  %v595_v14 = vmax.f32 %v575_v5, 0.0 }
 0x292   :  { %v457_v59 = vpop.permute.xlu1 %456  ;;  %v472_v60 = vpop.permute.xlu0 %471 }
 0x293   :  { %v540_v63 = vadd.f32 %v539_v47, %v472_v60  ;;  %v581_v8 = vadd.f32 %v580_v48, %v472_v60  ;;  %v452_v10 = vpop.permute.xlu2 %451  ;;  %v531_v13 = vadd.f32 %v530_v41, %v457_v59  ;;  %v572_v7 = vadd.f32 %v571_v42, %v457_v59 }
 0x294   :  { %v528_v3 = vadd.f32 %v527_v39, %v452_v10  ;;  %v569_v15 = vadd.f32 %v568_v40, %v452_v10 }
 0x295   :  { %v598_v0 = vmax.f32 %v540_v63, 0.0  ;;  %v599_v2 = vmax.f32 %v581_v8, 0.0  ;;  %v592_v17 = vmax.f32 %v531_v13, 0.0  ;;  %v593_v18 = vmax.f32 %v572_v7, 0.0 }
 0x296   :  { %v590_v20 = vmax.f32 %v528_v3, 0.0  ;;  %v591_v22 = vmax.f32 %v569_v15, 0.0 }
 0x297   :  { %618 = vmatpush.msra.mxu2 %v598_v0  ;;  %638 = vmatpush.msra.mxu3 %v599_v2 }
 0x299   :  { %619 = vmatpush.msra.mxu2 %v596_v11  ;;  %639 = vmatpush.msra.mxu3 %v597_v12 }
 0x29a   :  { %v442_v16 = vpop.permute.xlu1 %441  ;;  %v447_v4 = vpop.permute.xlu0 %446 }
 0x29b   :  { %v525_v6 = vadd.f32 %v524_v35, %v447_v4  ;;  %620 = vmatpush.msra.mxu2 %v594_v1  ;;  %v566_v19 = vadd.f32 %v565_v36, %v447_v4  ;;  %640 = vmatpush.msra.mxu3 %v595_v14  ;;  %v522_v21 = vadd.f32 %v521_v33, %v442_v16 }
 0x29c   :  { %v563_v23 = vadd.f32 %v1126_v34, %v442_v16  ;;  %v604_v29 = vpop.permute.xlu2 %603 }
 0x29d   :  { %621 = vmatpush.msra.mxu2 %v592_v17  ;;  %641 = vmatpush.msra.mxu3 %v593_v18  ;;  %v588_v24 = vmax.f32 %v525_v6, 0.0  ;;  %v589_v25 = vmax.f32 %v566_v19, 0.0  ;;  %v586_v26 = vmax.f32 %v522_v21, 0.0 }
 0x29e   :  { %v587_v28 = vmax.f32 %v563_v23, 0.0 }
 0x29f   :  { %622 = vmatpush.msra.mxu2 %v590_v20  ;;  %642 = vmatpush.msra.mxu3 %v591_v22 }
 0x2a1   :  { %623 = vmatpush.msra.mxu2 %v588_v24  ;;  %643 = vmatpush.msra.mxu3 %v589_v25 }
 0x2a3   :  { %624 = vmatpush.msra.mxu2 %v586_v26  ;;  %644 = vmatpush.msra.mxu3 %v587_v28 }
 0x2a4   :  { %719 = vmatmul.msk.f32.vlgmr.msra.gmra.mxu2 %vm114_vm0, %v67_v27  ;;  %720 = vmatmul.msk.f32.vlgmr.msra.gmra.mxu3 %vm114_vm0, %v67_v27 }
 0x327   :  { %v626_v30 = vpop.f32.mrf.mxu2  ;;  %v646_v32 = vpop.f32.mrf.mxu3 }
 0x328   :  { %v627_v31 = vadd.f32 %v626_v30, %v604_v29  ;;  %v647_v33 = vadd.f32 %v646_v32, %v604_v29 }
 0x32a   :  { %v649_v34 = vsub.f32 %v627_v31, %v1077_v37  ;;  %v650_v35 = vsub.f32 %v647_v33, %v1082_v38 }
 0x32c   :  { %v651_v36 = vmul.f32 %v649_v34, %v649_v34  ;;  %v652_v39 = vmul.f32 %v650_v35, %v650_v35 }
 0x32e   :  { %653 = vst [vmem:[#allocation2] sm:$0xff] %v651_v36 }
 0x32f   :  { %654 = vst [vmem:[#allocation2 + $0x8] sm:$0xff] %v652_v39 }
 0x330   :  { %665 = dma.vmem_to_hbm [thread:$0]  %s661_s9, 256, %s663_s2, [#allocation3]  }
 0x331   :  { %812 = dma.done.wait [#allocation3], 256  }
 0x332   :  { %813 = vsyncadd [#allocation3], 4294967040 }
 0x333   :  { %670 = vsyncpa [#allocation3], 1 }

</bundles_post_ra>
